<compile_context>
chip_gen: v7x
topology: tpu7x:2x2x1
jax: 0.10.0
libtpu: 0.0.40
codegen_flags: <defaults>
</compile_context>

<pallas_src>
import functools

import jax
import jax.numpy as jnp
import numpy as np
from jax.experimental import pallas as pl
from jax.experimental.pallas import tpu as pltpu


# ---------------------------------------------------------------------------
# helpers
# ---------------------------------------------------------------------------
def _round_up(x, m):
    return ((x + m - 1) // m) * m


def _pad_to(x, shape):
    return jnp.pad(x, [(0, t - s) for s, t in zip(x.shape, shape)])


def _pick_tile(n, pref=512):
    # n is always a multiple of 128 after padding.
    for t in (pref, 256, 128):
        if t <= n and n % t == 0:
            return t
    return n


# ---------------------------------------------------------------------------
# Kernel 1: per-relation feature transform  XW[r] = X @ W_r   (fully parallel)
# ---------------------------------------------------------------------------
def _xw_kernel(x_ref, w_ref, o_ref, *, compute_dtype):
    x = x_ref[...].astype(compute_dtype)
    w = w_ref[0].astype(compute_dtype)
    o_ref[0] = jnp.dot(x, w, preferred_element_type=jnp.float32).astype(o_ref.dtype)


def _xw_precompute(X, W, *, compute_dtype, row_tile):
    N_pad, F_pad = X.shape
    R = W.shape[0]
    return pl.pallas_call(
        functools.partial(_xw_kernel, compute_dtype=compute_dtype),
        out_shape=jax.ShapeDtypeStruct((R, N_pad, F_pad), compute_dtype),
        grid_spec=pltpu.PrefetchScalarGridSpec(
            num_scalar_prefetch=0,
            grid=(N_pad // row_tile, R),
            in_specs=[
                pl.BlockSpec((row_tile, F_pad), lambda i, r: (i, 0)),      # X tile
                pl.BlockSpec((1, F_pad, F_pad), lambda i, r: (r, 0, 0)),   # W_r
            ],
            out_specs=pl.BlockSpec((1, row_tile, F_pad), lambda i, r: (r, i, 0)),
        ),
        compiler_params=pltpu.CompilerParams(
            dimension_semantics=("parallel", "parallel")),
    )(X, W)


# ---------------------------------------------------------------------------
# Kernel 2: relation/K reduction   out[i] = sum_{r,k} A[r, i, k] @ XW[r, k]
#           with fused bias / relu epilogue.  Output block is resident across
#           the two trailing reduction axes and is used directly as the f32
#           accumulator (no scratch).
# ---------------------------------------------------------------------------
def _spmm_kernel(*refs, do_relu, do_bias):
    if do_bias:
        a_ref, xw_ref, b_ref, o_ref = refs
    else:
        a_ref, xw_ref, o_ref = refs
        b_ref = None

    r = pl.program_id(1)
    k = pl.program_id(2)

    @pl.when(jnp.logical_and(r == 0, k == 0))
    def _():
        o_ref[...] = jnp.zeros_like(o_ref)

    o_ref[...] += jnp.dot(a_ref[0], xw_ref[0],
                          preferred_element_type=jnp.float32).astype(o_ref.dtype)

    @pl.when(jnp.logical_and(r == pl.num_programs(1) - 1,
                             k == pl.num_programs(2) - 1))
    def _():
        h = o_ref[...]
        if do_bias:
            h = h + b_ref[...]
        if do_relu:
            h = jnp.maximum(h, 0.0)
        o_ref[...] = h


def _rel_spmm(A, XW, bias, *, do_relu, do_bias, row_tile, k_tile):
    R, N_pad, _ = A.shape
    F_pad = XW.shape[2]

    in_specs = [
        pl.BlockSpec((1, row_tile, k_tile), lambda i, r, k: (r, i, k)),   # A_r tile
        pl.BlockSpec((1, k_tile, F_pad), lambda i, r, k: (r, k, 0)),      # XW_r tile
    ]
    inputs = [A, XW]
    if do_bias:
        in_specs.append(pl.BlockSpec((1, F_pad), lambda i, r, k: (0, 0)))
        inputs.append(bias)

    return pl.pallas_call(
        functools.partial(_spmm_kernel, do_relu=do_relu, do_bias=do_bias),
        out_shape=jax.ShapeDtypeStruct((N_pad, F_pad), jnp.float32),
        grid_spec=pltpu.PrefetchScalarGridSpec(
            num_scalar_prefetch=0,
            grid=(N_pad // row_tile, R, N_pad // k_tile),
            in_specs=in_specs,
            out_specs=pl.BlockSpec((row_tile, F_pad), lambda i, r, k: (i, 0)),
        ),
        compiler_params=pltpu.CompilerParams(
            dimension_semantics=("parallel", "arbitrary", "arbitrary")),
    )(*inputs)


def rel_conv_layer(A_cd, X_f32, W_cd, bias, *, do_relu, do_bias, compute_dtype,
                   row_tile, k_tile):
    XW = _xw_precompute(X_f32, W_cd, compute_dtype=compute_dtype, row_tile=row_tile)
    return _rel_spmm(A_cd, XW, bias, do_relu=do_relu, do_bias=do_bias,
                     row_tile=row_tile, k_tile=k_tile)


# ---------------------------------------------------------------------------
# Kernel 3: relational link predictor edge scoring (no (E, 2F) concat):
#   score = relu( h_src @ Wp_src + h_dst @ Wp_dst + b )
# ---------------------------------------------------------------------------
def _edge_score_kernel(hs_ref, hd_ref, ws_ref, wd_ref, b_ref, o_ref, *, compute_dtype):
    hs = hs_ref[...].astype(compute_dtype)
    hd = hd_ref[...].astype(compute_dtype)
    s = jnp.dot(hs, ws_ref[...], preferred_element_type=jnp.float32)
    s = s + jnp.dot(hd, wd_ref[...], preferred_element_type=jnp.float32)
    s = s + b_ref[...]
    o_ref[...] = jnp.maximum(s, 0.0).astype(o_ref.dtype)


def edge_score(Hs, Hd, Ws, Wd, b2d, *, compute_dtype, edge_tile):
    E_pad, F_pad = Hs.shape
    C_pad = Ws.shape[1]
    return pl.pallas_call(
        functools.partial(_edge_score_kernel, compute_dtype=compute_dtype),
        out_shape=jax.ShapeDtypeStruct((E_pad, C_pad), jnp.float32),
        grid_spec=pltpu.PrefetchScalarGridSpec(
            num_scalar_prefetch=0,
            grid=(E_pad // edge_tile,),
            in_specs=[
                pl.BlockSpec((edge_tile, F_pad), lambda i: (i, 0)),
                pl.BlockSpec((edge_tile, F_pad), lambda i: (i, 0)),
                pl.BlockSpec((F_pad, C_pad), lambda i: (0, 0)),
                pl.BlockSpec((F_pad, C_pad), lambda i: (0, 0)),
                pl.BlockSpec((1, C_pad), lambda i: (0, 0)),
            ],
            out_specs=pl.BlockSpec((edge_tile, C_pad), lambda i: (i, 0)),
        ),
        compiler_params=pltpu.CompilerParams(
            dimension_semantics=("parallel",)),
    )(Hs, Hd, Ws, Wd, b2d)


# ---------------------------------------------------------------------------
# Full LinkScoreModel forward.
# ---------------------------------------------------------------------------
def link_score_forward(A, X, src, dst, params, rel_names, *,
                       compute_dtype=jnp.float32):
    W_rel, h_bias, W_pred, b_pred = params
    R, N, _ = A.shape
    F = X.shape[1]
    C = W_pred.shape[1]
    E = src.shape[0]

    # lane-dense / sublane-dense padding
    N_pad = _round_up(N, 128)
    F_pad = _round_up(F, 128)
    C_pad = _round_up(C, 128)
    E_pad = _round_up(E, 128)

    row_tile = _pick_tile(N_pad)
    k_tile = _pick_tile(N_pad)
    edge_tile = _pick_tile(E_pad)

    A_p = _pad_to(A, (R, N_pad, N_pad)).astype(compute_dtype)  # dominant bytes: cast once
    X_p = _pad_to(X, (N_pad, F_pad))                            # f32; cast in-kernel
    W_p = _pad_to(W_rel, (R, F_pad, F_pad)).astype(compute_dtype)
    b_p = _pad_to(h_bias.reshape(1, F), (1, F_pad))             # bias added in f32

    # --- RelGraphConvTwoLayer (self_loop=False, activation=None, dropout=0.0) ---
    h1 = rel_conv_layer(A_p, X_p, W_p, None, do_relu=True, do_bias=False,
                        compute_dtype=compute_dtype, row_tile=row_tile, k_tile=k_tile)
    h2 = rel_conv_layer(A_p, h1, W_p, b_p, do_relu=False, do_bias=True,
                        compute_dtype=compute_dtype, row_tile=row_tile, k_tile=k_tile)

    # --- RelLinkPredictor ---
    # relu([h_src; h_dst] @ W_pred + b)  ==  relu(h_src @ Wp_s + h_dst @ Wp_d + b)
    Wp_s = _pad_to(W_pred[:F], (F_pad, C_pad)).astype(compute_dtype)
    Wp_d = _pad_to(W_pred[F:], (F_pad, C_pad)).astype(compute_dtype)
    bp = _pad_to(b_pred.reshape(1, C), (1, C_pad))

    src_p = jnp.pad(src, (0, E_pad - E))
    dst_p = jnp.pad(dst, (0, E_pad - E))
    # TODO(synk): fold this endpoint gather into the score kernel via
    # PrefetchScalarGridSpec(num_scalar_prefetch=2) + pl.Element row index_maps
    # so the gathered (E, F) operands never round-trip HBM.
    Hs = h2[src_p]
    Hd = h2[dst_p]

    scores = edge_score(Hs, Hd, Wp_s, Wp_d, bp,
                        compute_dtype=compute_dtype, edge_tile=edge_tile)[:E, :C]

    h_out = h2[:N, :F]
    e_per_rel = E // len(rel_names)
    link_emb = {rel: scores[i * e_per_rel:(i + 1) * e_per_rel]
                for i, rel in enumerate(rel_names)}
    return {"NodeEmbeddings": {"node": h_out}, "LinkEmbedding": link_emb}


# ---------------------------------------------------------------------------
# Pure-JAX reference of the same math (sanity check).
# ---------------------------------------------------------------------------
def reference_forward(A, X, src, dst, params):
    W_rel, h_bias, W_pred, b_pred = params
    h1 = jax.nn.relu(jnp.einsum("rvu,uf,rfg->vg", A, X, W_rel))
    h2 = jnp.einsum("rvu,uf,rfg->vg", A, h1, W_rel) + h_bias
    e = jnp.concatenate([h2[src], h2[dst]], axis=-1)
    s = jax.nn.relu(e @ W_pred + b_pred)
    return h2, s


if __name__ == "__main__":
    # --- small deterministic problem ---
    N = 16          # nodes (single node type)
    F = 32          # in_feat == hid_feat == out_feat
    rel_names = ["rel0", "rel1", "rel2", "rel3"]
    R = len(rel_names)
    C = R           # RelLinkPredictor num_classes = len(rel_names)
    E_PER_REL = 8

    key = jax.random.PRNGKey(0)
    k_x, k_src, k_dst, k_w, k_wp, k_bp = jax.random.split(key, 6)

    # node features
    X = jax.random.normal(k_x, (N, F), dtype=jnp.float32)

    # random edges per relation
    src = jax.random.randint(k_src, (R * E_PER_REL,), 0, N)
    dst = jax.random.randint(k_dst, (R * E_PER_REL,), 0, N)

    # dense right-normalized adjacency  A[r, v, u] = count(u->v in r) / max(indeg_r(v), 1)
    A = jnp.zeros((R, N, N), dtype=jnp.float32)
    for r in range(R):
        s_r = src[r * E_PER_REL:(r + 1) * E_PER_REL]
        d_r = dst[r * E_PER_REL:(r + 1) * E_PER_REL]
        A = A.at[r, d_r, s_r].add(1.0)
    indeg = jnp.clip(A.sum(axis=-1, keepdims=True), 1.0, None)
    A = A / indeg

    # --- deterministic parameter init (shapes from the module __init__) ---
    gain = float(np.sqrt(2.0))
    bound_w = gain * float(np.sqrt(6.0 / (F + F)))
    W_rel = jax.random.uniform(k_w, (R, F, F), jnp.float32, -bound_w, bound_w)
    h_bias = jnp.zeros((F,), dtype=jnp.float32)
    bound_p = 1.0 / float(np.sqrt(2 * F))
    W_pred = jax.random.uniform(k_wp, (2 * F, C), jnp.float32, -bound_p, bound_p)
    b_pred = jax.random.uniform(k_bp, (C,), jnp.float32, -bound_p, bound_p)

    params = (W_rel, h_bias, W_pred, b_pred)

    # --- pure-JAX reference ---
    h_ref, s_ref = reference_forward(A, X, src, dst, params)
    s_ref_split = {rel: s_ref[i * E_PER_REL:(i + 1) * E_PER_REL]
                   for i, rel in enumerate(rel_names)}

    # --- Pallas, f32 matmul inputs (exact-ish path) ---
    out = link_score_forward(A, X, src, dst, params, rel_names,
                             compute_dtype=jnp.float32)
    out = jax.block_until_ready(out)
    np.testing.assert_allclose(np.asarray(out["NodeEmbeddings"]["node"]),
                               np.asarray(h_ref), rtol=1e-4, atol=1e-4)
    for rel in rel_names:
        np.testing.assert_allclose(np.asarray(out["LinkEmbedding"][rel]),
                                   np.asarray(s_ref_split[rel]), rtol=1e-4, atol=1e-4)

    # --- Pallas, bf16 matmul inputs with f32 accumulation (v5e/v6e/v7x MXU path) ---
    out_bf16 = link_score_forward(A, X, src, dst, params, rel_names,
                                  compute_dtype=jnp.bfloat16)
    out_bf16 = jax.block_until_ready(out_bf16)
    np.testing.assert_allclose(np.asarray(out_bf16["NodeEmbeddings"]["node"]),
                               np.asarray(h_ref), rtol=1e-1, atol=1e-1)
    for rel in rel_names:
        np.testing.assert_allclose(np.asarray(out_bf16["LinkEmbedding"][rel]),
                                   np.asarray(s_ref_split[rel]), rtol=1e-1, atol=1e-1)

    print("KERNEL_OK")
</pallas_src>

<mosaic_0001>
module attributes {stable_mosaic.version = 11 : i64} {
  func.func @_xw_kernel(%arg0: i32, %arg1: i32, %arg2: memref<128x128xf32, #tpu.memory_space<vmem>>, %arg3: memref<1x128x128xf32, #tpu.memory_space<vmem>>, %arg4: memref<1x128x128xf32, #tpu.memory_space<vmem>>) attributes {dimension_semantics = [#tpu.dimension_semantics<parallel>, #tpu.dimension_semantics<parallel>], iteration_bounds = array<i64: 1, 4>, scalar_prefetch = 0 : i64, scratch_operands = 0 : i64, tpu.core_type = #tpu.core_type<tc>, window_params = [{transform_indices = @transform_0, window_bounds = array<i64: 128, 128>}, {transform_indices = @transform_1, window_bounds = array<i64: 1, 128, 128>}, {transform_indices = @transform_2, window_bounds = array<i64: 1, 128, 128>}]} {
    %c0 = arith.constant 0 : index
    %c0_0 = arith.constant 0 : index
    %0 = vector.load %arg2[%c0, %c0_0] : memref<128x128xf32, #tpu.memory_space<vmem>>, vector<128x128xf32>
    %c0_1 = arith.constant 0 : index
    %c0_2 = arith.constant 0 : index
    %c0_3 = arith.constant 0 : index
    %1 = vector.load %arg3[%c0_1, %c0_2, %c0_3] : memref<1x128x128xf32, #tpu.memory_space<vmem>>, vector<1x128x128xf32>
    %2 = vector.shape_cast %1 : vector<1x128x128xf32> to vector<128x128xf32>
    %cst = arith.constant dense<0.000000e+00> : vector<128x128xf32>
    %3 = tpu.matmul %0, %2, %cst {dimension_numbers = #tpu.dot_dimension_numbers<[1], [0], [0], [1], [0, 0, 1, 1], [], []>} : vector<128x128xf32>, vector<128x128xf32>, vector<128x128xf32> -> vector<128x128xf32>
    %c0_4 = arith.constant 0 : index
    %c0_5 = arith.constant 0 : index
    %c0_6 = arith.constant 0 : index
    %4 = vector.load %arg4[%c0_4, %c0_5, %c0_6] : memref<1x128x128xf32, #tpu.memory_space<vmem>>, vector<1x128x128xf32>
    %5 = vector.shape_cast %4 : vector<1x128x128xf32> to vector<128x128xf32>
    %6 = vector.shape_cast %3 : vector<128x128xf32> to vector<1x128x128xf32>
    tpu.vector_store %arg4[%c0_4, %c0_5, %c0_6], %6 {strides = array<i32>} : memref<1x128x128xf32, #tpu.memory_space<vmem>>, vector<1x128x128xf32>,
    return
  }
  func.func @transform_0(%arg0: i32, %arg1: i32) -> (i32, i32) {
    %c0_i32 = arith.constant 0 : i32
    %c0_i32_0 = arith.constant 0 : i32
    return %arg0, %c0_i32 : i32, i32
  }
  func.func @transform_1(%arg0: i32, %arg1: i32) -> (i32, i32, i32) {
    %c0_i32 = arith.constant 0 : i32
    %c0_i32_0 = arith.constant 0 : i32
    %c0_i32_1 = arith.constant 0 : i32
    return %arg1, %c0_i32, %c0_i32_0 : i32, i32, i32
  }
  func.func @transform_2(%arg0: i32, %arg1: i32) -> (i32, i32, i32) {
    %c0_i32 = arith.constant 0 : i32
    %c0_i32_0 = arith.constant 0 : i32
    return %arg1, %arg0, %c0_i32 : i32, i32, i32
  }
}

</mosaic_0001>

<bundles_post_ra>
// kernel: tpu_custom_call.1
= control target key start
LH: loop header
LB: loop body
LE: loop exit
PB: predicated region body
PF: predicated region fallthrough
CT: control target
= control target key end

     0   :  { %7 = vsyncpa [#allocation3], 0  ;;  %s1172_s0 = inlined_call_operand.hbm [shape: f32[128,128], index: 0, kind: input, shape index: {}]   ;;  %s1173_s1 = inlined_call_operand.hbm [shape: f32[4,128,128], index: 1, kind: input, shape index: {}]   ;;  %s1174_s2 = inlined_call_operand.hbm [shape: f32[4,128,128], index: 2, kind: output, shape index: {}]  }
   0x1   :  { %8 = vsyncpa [#allocation6], 0 }
   0x2   :  { %10 = vsyncpa [#allocation6 + $0x1], 0 }
   0x3   :  { %11 = vsyncpa [#allocation4], 0 }
   0x4   :  { %13 = vsyncpa [#allocation4 + $0x1], 0  ;;  %s908_s9 = smov 0   ;;  %s910_s10 = smov 0  }
   0x5   :  { %s912_s11 = smov 0   ;;  %s914_s12 = smov 0  }
   0x6   :  { %s916_s13 = smov 0   ;;  %s918_s14 = smov 0  }
   0x7 LB: > { %s508_s15 = sadd.s32 4294967295, %s884_s14   ;;  %s509_s16 = sadd.s32 4294967294, %s884_s14   ;;  %s884_s14 = sphi %s918_s14, %s19_s14   ;;  %s880_s13 = sphi %s916_s13, %s1197_s13   ;;  %s876_s12 = sphi %s914_s12, %s1196_s12   ;;  %s872_s11 = sphi %s912_s11, %s1195_s11   ;;  %s868_s10 = sphi %s910_s10, %s1194_s10   ;;  %s864_s9 = sphi %s908_s9, %s1193_s9  }
   0x8   : > { %p77_p0 = scmp.ne.s32.totalorder %s868_s10, %s864_s9  ;;  %p942_p1 = scmp.eq.s32.totalorder %s508_s15, 0 }
   0x9   : > { %p946_p2 = scmp.eq.s32.totalorder %s508_s15, 3  ;;  %p109_p3 = scmp.eq.s32.totalorder %s509_s16, 3 }
   0xa   : > { %s1179_s17 = scalar_select %p942_p1, 1, 0 }
   0xb   : > { %s1180_s18 = scalar_select %p946_p2, 1, 0 }
   0xc   : > { %p952_p4 = por %p942_p1, %p77_p0  ;;  %p510_p5 = scmp.ge.s32.totalorder %s884_s14, 1 }
   0xd   : > { %p957_p6 = por %p109_p3, %p77_p0  ;;  %p116_p7 = scmp.lt.s32.totalorder %s884_s14, 5 }
   0xe   : > { %s1181_s19 = scalar_select %p952_p4, 1, 0 }
   0xf   : > { %s1182_s20 = scalar_select %p957_p6, 1, 0 }
  0x10   : > { %p962_p8 = pnand %p510_p5, %p116_p7  ;;  %s886_s22 = smov [#allocation2]  }
  0x11   : > { %s131_s23 = sshll.u32 %s886_s22, 4  ;;  %s28_s25 = sadd.s32 1, %s880_s13  ;;  %s132_s23 = int_to_ptr.vmem [resolvable:$true] %s131_s23 }
  0x12   : > { %s1183_s21 = scalar_select %p962_p8, 1, 0 }
  0x13   : > { %p671_p9 = pneg %p962_p8  ;;  %s740_s28 = scalar_lea.hbm %s1172_s0, 2048 }
  0x14   : > { %p741_p11 = scmp.ne.s32.totalorder %s1172_s0, %s740_s28  ;;  %p747_p3 = scmp.lt.u32.totalorder %s740_s28, %s1172_s0 }
  0x15   : > { %p970_p10 = pnand %p671_p9, %p942_p1 }
  0x17   : > { %p742_p12 = pneg %p970_p10 }
  0x19   : > { %p743_p13 = pnand %p742_p12, %p741_p11 }
  0x1b   : > { %p744_p0 = pneg %p743_p13 }
  0x1d   : > { %p749_p5 = pnand %p747_p3, %p744_p0 }
  0x1f   : > { %752 = shalt.err (!%p749_p5)
}
  0x20   : > { %s753_s5 = scalar_lea.vmem %s132_s23, 2048  ;;  %p761_p4 = scmp.lt.s32.totalorder %s132_s23, %s132_s23 }
  0x21   : > { %p754_p7 = scmp.ne.s32.totalorder %s132_s23, %s753_s5  ;;  %p762_p1 = scmp.lt.s32.totalorder %s753_s5, %s753_s5 }
  0x23   : > { %p756_p9 = pnand %p754_p7, %p742_p12  ;;  %p763_p8 = por %p762_p1, %p761_p4 }
  0x25   : > { %p757_p6 = pneg %p756_p9 }
  0x27   : > { %p764_p2 = pnand %p763_p8, %p757_p6 }
  0x29   : > { %767 = shalt.err (!%p764_p2)
}
  0x2a   : > { %s887_s6 = smov 128   ;;  %s888_s7 = smov 8  }
  0x2b   : > { %674 = dma.hbm_to_vmem [thread:$0]  (!%p970_p10), %s1172_s0, 2048, %s132_s23, [#allocation3], %s887_s6, %s887_s6, %s888_s7  }
  0x2c   : > { %p29_p1 = scmp.ge.s32.totalorder %s28_s25, 4  ;;  %s64_s16 = sadd.s32 1, %s872_s11 }
  0x2d   : > { %p71_p2 = scmp.ne.s32.totalorder %s872_s11, %s868_s10  ;;  %p72_p4 = scmp.eq.s32.totalorder %s884_s14, 0 }
  0x2e   : > { %s1199_s25 = smov (%p29_p1, %s28_s25), 0  ;;  %p1186_p8 = scmp.ne.s32.totalorder %s1180_s18, 0 }
  0x2f   : > { %p1000_p6 = por %p72_p4, %p71_p2  ;;  %s61_s26 = ssub.s32 %s880_s13, %s1199_s25 }
  0x30   : > { %p1006_p11 = por %p1186_p8, %p71_p2  ;;  %p684_p12 = scmp.lt.s32.totalorder %s884_s14, 4 }
  0x31   : > { %p62_p10 = scmp.eq.s32.totalorder %s61_s26, 0  ;;  %s145_s23 = sand.u32 1, %s872_s11  }
  0x32   : > { %s513_s27 = sshll.u32 %s145_s23, 7  ;;  %s525_s29 = sshll.u32 %s880_s13, 11 }
  0x33   : > { %s1015_s28 = scalar_select %p62_p10, %s872_s11, %s64_s16  }
  0x34   : > { %s1021_s4 = scalar_lea.hbm %s1173_s1, %s525_s29  ;;  %s149_s18 = scalar_lea.vmem [#allocation5], %s513_s27 }
  0x35   : > { %s156_s5 = sshll.u32 %s149_s18, 4  ;;  %p1027_p13 = pnand %p684_p12, %p1000_p6  ;;  %s1023_s5 = int_to_ptr.vmem [resolvable:$true] %s156_s5 }
  0x36   : > { %s1031_s15 = scalar_lea.sflag [#allocation6], %s145_s23  ;;  %s768_s16 = scalar_lea.hbm %s1021_s4, 2048 }
  0x37   : > { %p769_p0 = scmp.ne.s32.totalorder %s1021_s4, %s768_s16  ;;  %p770_p3 = pneg %p1027_p13 }
  0x38   : > { %s773_s22 = scalar_lea.hbm %s1173_s1, 8192  ;;  %p774_p9 = scmp.lt.u32.totalorder %s1021_s4, %s1173_s1 }
  0x39   : > { %p771_p5 = pnand %p770_p3, %p769_p0  ;;  %p775_p1 = scmp.lt.u32.totalorder %s773_s22, %s768_s16 }
  0x3a   : > { %p777_p4 = scmp.lt.u32.totalorder %s768_s16, %s1021_s4 }
  0x3b   : > { %p772_p7 = pneg %p771_p5  ;;  %p776_p2 = por %p775_p1, %p774_p9 }
  0x3d   : > { %p778_p6 = por %p777_p4, %p776_p2 }
  0x3f   : > { %p779_p8 = pnand %p778_p6, %p772_p7 }
  0x41   : > { %782 = shalt.err (!%p779_p8)
}
  0x42   : > { %s783_s23 = scalar_lea.vmem %s1023_s5, 2048  ;;  %s889_s3 = smov [#allocation5]  }
  0x43   : > { %p784_p12 = scmp.ne.s32.totalorder %s1023_s5, %s783_s23  ;;  %s788_s18 = sshll.u32 %s889_s3, 4  ;;  %s789_s18 = int_to_ptr.vmem [resolvable:$false] %s788_s18 }
  0x44   : > { %s790_s26 = scalar_lea.vmem %s789_s18, 4096  ;;  %p791_p5 = scmp.lt.s32.totalorder %s1023_s5, %s789_s18 }
  0x45   : > { %p786_p10 = pnand %p784_p12, %p770_p3  ;;  %p792_p9 = scmp.lt.s32.totalorder %s790_s26, %s783_s23 }
  0x47   : > { %p787_p0 = pneg %p786_p10  ;;  %p793_p1 = por %p792_p9, %p791_p5 }
  0x49   : > { %p794_p2 = pnand %p793_p1, %p787_p0 }
  0x4b   : > { %797 = shalt.err (!%p794_p2)
}
  0x4c   : > { %678 = dma.hbm_to_vmem [thread:$0]  (!%p1027_p13), %s1021_s4, 2048, %s1023_s5, %s1031_s15, %s887_s6, %s887_s6, %s888_s7  }
  0x4d   : > { %p1189_p3 = scmp.ne.s32.totalorder %s1183_s21, 0 }
  0x4e   : > { %p1190_p7 = scmp.ne.s32.totalorder (!%p1189_p3), %s1179_s17, 0 }
  0x4f   : > { %168 = sbr.rel (%p1189_p3) target bundleno = 366 (0x16e), region = 28 }
  0x56   : > { %851 = dma.done.wait (%p1190_p7), [#allocation3], 2048  }
  0x57   : > { %853 = vsyncadd (%p1190_p7), [#allocation3], 4294965248  ;;  %s1069_s16 = sand.u32 1, %s868_s10   ;;  %p1191_p13 = scmp.ne.s32.totalorder %s1181_s19, 0 }
  0x58   : > { %s518_s8 = sshll.u32 %s1069_s16, 7  ;;  %s175_s27 = scalar_lea.sflag [#allocation6], %s1069_s16 }
  0x59   : > { %s1075_s6 = scalar_lea.vmem [#allocation5], %s518_s8 }
  0x5a   : > { %855 = dma.done.wait (%p1191_p13), %s175_s27, 2048  }
  0x5b   : > { %857 = vsyncadd (%p1191_p13), %s175_s27, 4294965248  ;;  %v217_v0 = vld [vmem:[%s1075_s6] sm:$0xff]  ;;  %v218_v1 = vld [vmem:[%s1075_s6 + $0x8] sm:$0xff]  ;;  %s1099_s17 = scalar_lea.vmem [#allocation7], %s518_s8  ;;  %s526_s19 = sshll.u32 %s876_s12, 11 }
  0x5c   : > { %v219_v2 = vld [vmem:[%s1075_s6 + $0x10] sm:$0xff]  ;;  %v615_v3 = vpack.c.bf16 %v218_v1, %v217_v0  ;;  %v220_v4 = vld [vmem:[%s1075_s6 + $0x18] sm:$0xff]  ;;  %v221_v6 = vld [vmem:[%s1075_s6 + $0x20] sm:$0xff]  ;;  %s410_s21 = sshll.u32 %s1099_s17, 4  ;;  %s1118_s5 = scalar_lea.hbm %s1174_s2, %s526_s19  ;;  %s1120_s21 = int_to_ptr.vmem [resolvable:$true] %s410_s21 }
  0x5d   : > { %v619_v5 = vpack.c.bf16 %v220_v4, %v219_v2  ;;  %v222_v7 = vld [vmem:[%s1075_s6 + $0x28] sm:$0xff]  ;;  %v201_v9 = vld [vmem:[#allocation2] sm:$0xff]  ;;  %v223_v11 = vld [vmem:[%s1075_s6 + $0x30] sm:$0xff]  ;;  %s395_s12 = scalar_lea.sflag [#allocation4], %s1069_s16  ;;  %s798_s15 = scalar_lea.vmem %s1120_s21, 2048 }
  0x5e   : > { %616 = vmatprep.subr.bf16.mxu0 %v615_v3  ;;  %647 = vmatprep.subr.bf16.mxu1 %v615_v3  ;;  %v623_v8 = vpack.c.bf16 %v222_v7, %v221_v6  ;;  %v209_v10 = vld [vmem:[#allocation2 + $0x40] sm:$0xff]  ;;  %v224_v12 = vld [vmem:[%s1075_s6 + $0x38] sm:$0xff]  ;;  %v226_v15 = vld [vmem:[%s1075_s6 + $0x48] sm:$0xff]  ;;  %p799_p4 = scmp.ne.s32.totalorder %s1120_s21, %s798_s15  ;;  %s890_s22 = smov [#allocation7]  }
  0x5f   : > { %618 = vmatpush3.bf16.msra.mxu0 %v615_v3  ;;  %655 = vmatpush3.bf16.msra.mxu1 %v615_v3  ;;  %v627_v13 = vpack.c.bf16 %v224_v12, %v223_v11  ;;  %v225_v14 = vld [vmem:[%s1075_s6 + $0x40] sm:$0xff]  ;;  %v227_v17 = vld [vmem:[%s1075_s6 + $0x50] sm:$0xff]  ;;  %v228_v18 = vld [vmem:[%s1075_s6 + $0x58] sm:$0xff]  ;;  %s802_s29 = sshll.u32 %s890_s22, 4  ;;  %s803_s29 = int_to_ptr.vmem [resolvable:$false] %s802_s29 }
  0x60   : > { %620 = vmatprep.subr.bf16.mxu0 %v619_v5  ;;  %648 = vmatprep.subr.bf16.mxu1 %v619_v5  ;;  %v631_v16 = vpack.c.bf16 %v226_v15, %v225_v14  ;;  %v635_v19 = vpack.c.bf16 %v228_v18, %v227_v17  ;;  %v229_v20 = vld [vmem:[%s1075_s6 + $0x60] sm:$0xff]  ;;  %v230_v21 = vld [vmem:[%s1075_s6 + $0x68] sm:$0xff]  ;;  %v231_v23 = vld [vmem:[%s1075_s6 + $0x70] sm:$0xff]  ;;  %p800_p6 = pnand %p799_p4, %p1006_p11  ;;  %s804_s30 = scalar_lea.vmem %s803_s29, 4096 }
  0x61   : > { %591 = vmatprep.mubr.f32.mxu0 %v201_v9  ;;  %603 = vmatprep.mubr.f32.mxu1 %v209_v10  ;;  %v639_v22 = vpack.c.bf16 %v230_v21, %v229_v20  ;;  %v232_v24 = vld [vmem:[%s1075_s6 + $0x78] sm:$0xff]  ;;  %v202_v26 = vld [vmem:[#allocation2 + $0x8] sm:$0xff]  ;;  %v203_v28 = vld [vmem:[#allocation2 + $0x10] sm:$0xff]  ;;  %p805_p12 = scmp.lt.s32.totalorder %s1120_s21, %s803_s29  ;;  %p806_p10 = scmp.lt.s32.totalorder %s804_s30, %s798_s15 }
  0x62   : > { %v643_v25 = vpack.c.bf16 %v232_v24, %v231_v23  ;;  %v210_v27 = vld [vmem:[#allocation2 + $0x48] sm:$0xff]  ;;  %v211_v29 = vld [vmem:[#allocation2 + $0x50] sm:$0xff]  ;;  %v204_v30 = vld [vmem:[#allocation2 + $0x18] sm:$0xff]  ;;  %p801_p8 = pneg %p800_p6 }
  0x63   : > { %622 = vmatpush3.bf16.msra.mxu0 %v619_v5  ;;  %656 = vmatpush3.bf16.msra.mxu1 %v619_v5  ;;  %v212_v31 = vld [vmem:[#allocation2 + $0x58] sm:$0xff]  ;;  %v205_v32 = vld [vmem:[#allocation2 + $0x20] sm:$0xff]  ;;  %v206_v34 = vld [vmem:[#allocation2 + $0x28] sm:$0xff]  ;;  %p807_p0 = por %p806_p10, %p805_p12 }
  0x64   : > { %624 = vmatprep.subr.bf16.mxu0 %v623_v8  ;;  %649 = vmatprep.subr.bf16.mxu1 %v623_v8  ;;  %v213_v33 = vld [vmem:[#allocation2 + $0x60] sm:$0xff]  ;;  %v214_v35 = vld [vmem:[#allocation2 + $0x68] sm:$0xff]  ;;  %v207_v36 = vld [vmem:[#allocation2 + $0x30] sm:$0xff] }
  0x65   : > { %v215_v37 = vld [vmem:[#allocation2 + $0x70] sm:$0xff]  ;;  %v208_v38 = vld [vmem:[#allocation2 + $0x38] sm:$0xff]  ;;  %p808_p5 = pnand %p807_p0, %p801_p8 }
  0x66   : > { %v216_v39 = vld [vmem:[#allocation2 + $0x78] sm:$0xff] }
  0x67   : > { %626 = vmatpush3.bf16.msra.mxu0 %v623_v8  ;;  %657 = vmatpush3.bf16.msra.mxu1 %v623_v8 }
  0x68   : > { %628 = vmatprep.subr.bf16.mxu0 %v627_v13  ;;  %650 = vmatprep.subr.bf16.mxu1 %v627_v13 }
  0x6b   : > { %630 = vmatpush3.bf16.msra.mxu0 %v627_v13  ;;  %658 = vmatpush3.bf16.msra.mxu1 %v627_v13 }
  0x6c   : > { %632 = vmatprep.subr.bf16.mxu0 %v631_v16  ;;  %651 = vmatprep.subr.bf16.mxu1 %v631_v16 }
  0x6f   : > { %634 = vmatpush3.bf16.msra.mxu0 %v631_v16  ;;  %659 = vmatpush3.bf16.msra.mxu1 %v631_v16 }
  0x70   : > { %636 = vmatprep.subr.bf16.mxu0 %v635_v19  ;;  %652 = vmatprep.subr.bf16.mxu1 %v635_v19 }
  0x73   : > { %638 = vmatpush3.bf16.msra.mxu0 %v635_v19  ;;  %660 = vmatpush3.bf16.msra.mxu1 %v635_v19 }
  0x74   : > { %640 = vmatprep.subr.bf16.mxu0 %v639_v22  ;;  %653 = vmatprep.subr.bf16.mxu1 %v639_v22 }
  0x77   : > { %642 = vmatpush3.bf16.msra.mxu0 %v639_v22  ;;  %661 = vmatpush3.bf16.msra.mxu1 %v639_v22 }
  0x78   : > { %644 = vmatprep.subr.bf16.mxu0 %v643_v25  ;;  %654 = vmatprep.subr.bf16.mxu1 %v643_v25 }
  0x7b   : > { %646 = vmatpush3.bf16.msra.mxu0 %v643_v25  ;;  %662 = vmatpush3.bf16.msra.mxu1 %v643_v25 }
  0x7e   : > { %592 = vmatmul.mubr.f32.vlgmr.msra.gmra.mrb[0].mxu0 %v202_v26  ;;  %604 = vmatmul.mubr.f32.vlgmr.msra.gmra.mrb[0].mxu1 %v210_v27 }
  0x7f   : > { %594 = vmatprep.mubr.f32.mxu0 %v203_v28  ;;  %606 = vmatprep.mubr.f32.mxu1 %v211_v29 }
  0x82   : > { %595 = vmatmul.mubr.f32.gmra.mrb[2].mxu0 %v204_v30  ;;  %607 = vmatmul.mubr.f32.gmra.mrb[2].mxu1 %v212_v31 }
  0x83   : > { %597 = vmatprep.mubr.f32.mxu0 %v205_v32  ;;  %609 = vmatprep.mubr.f32.mxu1 %v213_v33 }
  0x86   : > { %598 = vmatmul.mubr.f32.gmra.mrb[4].mxu0 %v206_v34  ;;  %610 = vmatmul.mubr.f32.gmra.mrb[4].mxu1 %v214_v35 }
  0x87   : > { %600 = vmatprep.mubr.f32.mxu0 %v207_v36  ;;  %612 = vmatprep.mubr.f32.mxu1 %v215_v37 }
  0x8a   : > { %601 = vmatmul.mubr.f32.gmra.mrb[6].mxu0 %v208_v38  ;;  %613 = vmatmul.mubr.f32.gmra.mrb[6].mxu1 %v216_v39 }
 0x151   : > { %v593_v40 = vpop.f32.mrb[0].mxu0  ;;  %v605_v41 = vpop.f32.mrb[0].mxu1 }
 0x152   : > { %379 = vst [vmem:[%s1099_s17 + $0x8] sm:$0xff] %v593_v40  ;;  %387 = vst [vmem:[%s1099_s17 + $0x48] sm:$0xff] %v605_v41  ;;  %v299_v42 = vpop.f32.mrb[1].mxu0  ;;  %v339_v43 = vpop.f32.mrb[1].mxu1 }
 0x153   : > { %378 = vst [vmem:[%s1099_s17] sm:$0xff] %v299_v42  ;;  %386 = vst [vmem:[%s1099_s17 + $0x40] sm:$0xff] %v339_v43 }
 0x155   : > { %v596_v44 = vpop.f32.mrb[2].mxu0  ;;  %v608_v45 = vpop.f32.mrb[2].mxu1 }
 0x156   : > { %381 = vst [vmem:[%s1099_s17 + $0x18] sm:$0xff] %v596_v44  ;;  %389 = vst [vmem:[%s1099_s17 + $0x58] sm:$0xff] %v608_v45  ;;  %v309_v46 = vpop.f32.mrb[3].mxu0  ;;  %v349_v47 = vpop.f32.mrb[3].mxu1 }
 0x157   : > { %380 = vst [vmem:[%s1099_s17 + $0x10] sm:$0xff] %v309_v46  ;;  %388 = vst [vmem:[%s1099_s17 + $0x50] sm:$0xff] %v349_v47 }
 0x159   : > { %v599_v48 = vpop.f32.mrb[4].mxu0  ;;  %v611_v49 = vpop.f32.mrb[4].mxu1 }
 0x15a   : > { %383 = vst [vmem:[%s1099_s17 + $0x28] sm:$0xff] %v599_v48  ;;  %391 = vst [vmem:[%s1099_s17 + $0x68] sm:$0xff] %v611_v49  ;;  %v319_v50 = vpop.f32.mrb[5].mxu0  ;;  %v359_v51 = vpop.f32.mrb[5].mxu1 }
 0x15b   : > { %382 = vst [vmem:[%s1099_s17 + $0x20] sm:$0xff] %v319_v50  ;;  %390 = vst [vmem:[%s1099_s17 + $0x60] sm:$0xff] %v359_v51 }
 0x15d   : > { %v602_v52 = vpop.f32.mrb[6].mxu0  ;;  %v614_v53 = vpop.f32.mrb[6].mxu1 }
 0x15e   : > { %385 = vst [vmem:[%s1099_s17 + $0x38] sm:$0xff] %v602_v52  ;;  %393 = vst [vmem:[%s1099_s17 + $0x78] sm:$0xff] %v614_v53  ;;  %v329_v54 = vpop.f32.mrb[7].mxu0  ;;  %v369_v55 = vpop.f32.mrb[7].mxu1 }
 0x15f   : > { %384 = vst [vmem:[%s1099_s17 + $0x30] sm:$0xff] %v329_v54  ;;  %392 = vst [vmem:[%s1099_s17 + $0x70] sm:$0xff] %v369_v55 }
 0x160   : > { %811 = shalt.err (!%p808_p5)
}
 0x161   : > { %s812_s23 = scalar_lea.hbm %s1118_s5, 2048  ;;  %s816_s26 = scalar_lea.hbm %s1174_s2, 8192 }
 0x162   : > { %p813_p9 = scmp.ne.s32.totalorder %s1118_s5, %s812_s23  ;;  %p817_p3 = scmp.lt.u32.totalorder %s1118_s5, %s1174_s2 }
 0x163   : > { %p818_p7 = scmp.lt.u32.totalorder %s816_s26, %s812_s23  ;;  %p820_p4 = scmp.lt.u32.totalorder %s812_s23, %s1118_s5 }
 0x164   : > { %p814_p1 = pnand %p813_p9, %p1006_p11 }
 0x165   : > { %p819_p13 = por %p818_p7, %p817_p3 }
 0x166   : > { %p815_p2 = pneg %p814_p1 }
 0x167   : > { %p821_p6 = por %p820_p4, %p819_p13 }
 0x169   : > { %p822_p8 = pnand %p821_p6, %p815_p2 }
 0x16b   : > { %825 = shalt.err (!%p822_p8)
}
 0x16c   : > { %s891_s6 = smov 128   ;;  %s892_s17 = smov 8  }
 0x16d   : > { %669 = dma.vmem_to_hbm [thread:$0]  (%p1006_p11), %s1120_s21, 2048, %s1118_s5, %s395_s12, %s891_s6, %s891_s6, %s892_s17  }
 0x16e PF: > { %p686_p12 = scmp.ge.s32.totalorder %s884_s14, 2  ;;  %s425_s19 = sand.u32 1, %s864_s9  }
 0x16f   : > { %p1192_p10 = scmp.ne.s32.totalorder %s1182_s20, 0  ;;  %s426_s7 = scalar_lea.sflag [#allocation4], %s425_s19 }
 0x171   : > { %p680_p0 = pnand %p686_p12, %p1192_p10 }
 0x173   : > { %859 = dma.done.wait (!%p680_p0), %s426_s7, 2048  }
 0x174   : > { %861 = vsyncadd (!%p680_p0), %s426_s7, 4294965248  ;;  %s19_s14 = sadd.s32 1, %s884_s14   ;;  %s1193_s9 = smov %s868_s10 }
 0x175   : > { %p16_p5 = scmp.ge.s32.totalorder %s19_s14, 6   ;;  %s1194_s10 = smov %s872_s11 }
 0x176   : > { %s1195_s11 = smov %s1015_s28  ;;  %s1196_s12 = smov %s880_s13 }
 0x177   : > { %s1197_s13 = smov %s1199_s25  ;;  %18 = sbr.rel (!%p16_p5) target bundleno = 7 (0x7), region = 79 }
 0x17e   :  { %431 = vsyncpa [#allocation3], 1 }
 0x17f   :  { %433 = vsyncpa [#allocation3 + $0x1], 1 }
 0x180   :  { %434 = vsyncpa [#allocation6], 1 }
 0x181   :  { %436 = vsyncpa [#allocation6 + $0x1], 1 }
 0x182   :  { %437 = vsyncpa [#allocation4], 1 }
 0x183   :  { %439 = vsyncpa [#allocation4 + $0x1], 1 }

</bundles_post_ra>
